<compile_context>
chip_gen: v5e
topology: v5e:2x2
jax: 0.10.0
libtpu: 0.0.40
codegen_flags: <defaults>
</compile_context>

<pallas_src>
import jax
import jax.numpy as jnp
from jax.experimental import pallas as pl
from jax.experimental.pallas import tpu as pltpu


HIDDEN = 32                 # nn.LSTM(hidden_size=32)
NUM_GATES = 4               # i, f, g, o (PyTorch gate order)
GATES = NUM_GATES * HIDDEN  # 128 -- compact gate width (exactly one lane block)
OUT_PAD = 128               # logits padded to a lane-dense 128-wide slab
MAX_T_CHUNK = 128           # timesteps per grid step (per streamed xp block)
MAX_UNROLL = 8              # bounded unroll of the in-kernel recurrence loop


def make_lstm_head_kernel(rem_steps, t_chunk, needs_mask, unroll):
    """Build the recurrence kernel with static chunking parameters baked in."""
    H = HIDDEN

    def kernel(xp_ref,    # (t_chunk, B, GATES) precomputed x@W_ih^T + b, this chunk
               h0_ref,    # (B, H)  hidden state after the peeled t=0 step
               c0_ref,    # (B, H)  cell   state after the peeled t=0 step
               whh_ref,   # (H, GATES)   recurrent weights (compact, transposed)
               wlin_ref,  # (H, OUT_PAD) final Linear weight (transposed, padded)
               blin_ref,  # (1, OUT_PAD) final Linear bias (padded)
               out_ref,   # (B, OUT_PAD) padded logits
               h_sc,      # VMEM (B, H) hidden state carried across chunks
               c_sc):     # VMEM (B, H) cell   state carried across chunks
        chunk = pl.program_id(0)

        @pl.when(chunk == 0)
        def _():
            h_sc[...] = h0_ref[...]
            c_sc[...] = c0_ref[...]

        # Hoist the recurrent weight load out of the (unrolled) recurrence.
        whh = whh_ref[...]
        # TODO(synk): on v6e/v7x, hold whh weight-stationary across timesteps via
        # pltpu.matmul_push_rhs / matmul_acc_lhs / matmul_pop.

        def step(t, carry):
            h, c = carry
            # Only this (B,H)@(H,4H) matmul sits on the serial h->h path; the
            # input projection for all timesteps was hoisted into the wrapper.
            gates = xp_ref[t] + jnp.dot(h, whh, preferred_element_type=jnp.float32)
            # Per-gate nonlinearities: sigmoid only on i/f/o, tanh only on g.
            # The lane realignment of the offset slices is cheap XLU work.
            i_g = jax.nn.sigmoid(gates[:, 0 * H:1 * H])
            f_g = jax.nn.sigmoid(gates[:, 1 * H:2 * H])
            g_g = jnp.tanh(gates[:, 2 * H:3 * H])
            o_g = jax.nn.sigmoid(gates[:, 3 * H:4 * H])
            c_new = f_g * c + i_g * g_g
            h_new = o_g * jnp.tanh(c_new)
            if needs_mask:  # only traced when (T-1) is not a multiple of t_chunk
                valid = (chunk * t_chunk + t) < rem_steps
                h_new = jnp.where(valid, h_new, h)
                c_new = jnp.where(valid, c_new, c)
            return h_new, c_new

        h, c = jax.lax.fori_loop(0, t_chunk, step, (h_sc[...], c_sc[...]),
                                 unroll=unroll)
        h_sc[...] = h
        c_sc[...] = c

        @pl.when(chunk == pl.num_programs(0) - 1)
        def _():
            # h_n.permute(1,0,2).flatten(1) == (B, H); ReLU; Linear -> lane-dense slab.
            relu_h = jnp.maximum(h, 0.0)
            out_ref[...] = (jnp.dot(relu_h, wlin_ref[...],
                                    preferred_element_type=jnp.float32)
                            + blin_ref[...])

    return kernel


@jax.jit
def text_classifier_forward(tokens, params):
    """tokens: (B, T) int32.  Returns logits (B, num_class) float32."""
    H = HIDDEN
    B, T = tokens.shape
    C = params["b_lin"].shape[-1]

    # Embedding gather directly in time-major order (no separate transpose).
    x_tme = params["emb"][tokens.T]                        # (T, B, E)

    # Hoisted input projection: one batched matmul for all timesteps, COMPACT
    # (4H = 128) gate layout, default MXU precision (HIGHEST dropped -- it
    # multiplies MXU passes and dominates wall time for long T).
    w_ih_t = params["w_ih"].T.astype(jnp.float32)          # (E, 4H)
    w_hh_t = params["w_hh"].T.astype(jnp.float32)          # (H, 4H)
    bias = (params["b_ih"] + params["b_hh"])[None, :]      # (1, 4H)
    xp = jnp.einsum("tbe,eg->tbg", x_tme, w_ih_t) + bias   # (T, B, 4H)

    # Peel t=0: h0 = c0 = 0, so the first recurrent matmul is identically zero.
    # Step 0 is pure elementwise on xp[0]; do it here and feed (h1, c1) to the
    # kernel, removing one MXU push+pop from the serial chain.
    g0 = xp[0]
    i0 = jax.nn.sigmoid(g0[:, 0 * H:1 * H])
    g0g = jnp.tanh(g0[:, 2 * H:3 * H])
    o0 = jax.nn.sigmoid(g0[:, 3 * H:4 * H])
    c1 = i0 * g0g                                          # f0 * c0 == 0
    h1 = o0 * jnp.tanh(c1)

    # Chunk the remaining T-1 timesteps into a pipelined grid axis; (h, c) are
    # carried in VMEM scratch across grid steps.
    rem = T - 1
    t_chunk = max(1, min(rem, MAX_T_CHUNK))
    n_chunks = max(1, -(-rem // t_chunk))
    t_total = n_chunks * t_chunk
    needs_mask = (rem == 0) or (rem % t_chunk != 0)
    unroll = max(1, min(t_chunk, MAX_UNROLL))

    xp_rest = xp[1:]
    if t_total != rem:
        xp_rest = jnp.concatenate(
            [xp_rest, jnp.zeros((t_total - rem, B, GATES), jnp.float32)], axis=0)

    # Final Linear padded to a lane-dense 128-wide output slab.
    w_lin_p = jnp.zeros((H, OUT_PAD), jnp.float32).at[:, :C].set(params["w_lin"].T)
    b_lin_p = jnp.zeros((1, OUT_PAD), jnp.float32).at[0, :C].set(params["b_lin"])

    kernel = make_lstm_head_kernel(rem, t_chunk, needs_mask, unroll)

    grid_spec = pltpu.PrefetchScalarGridSpec(
        num_scalar_prefetch=0,
        grid=(n_chunks,),
        in_specs=[
            pl.BlockSpec((t_chunk, B, GATES), lambda i: (i, 0, 0)),  # xp chunk (streamed)
            pl.BlockSpec((B, H), lambda i: (0, 0)),                  # h after peeled step 0
            pl.BlockSpec((B, H), lambda i: (0, 0)),                  # c after peeled step 0
            pl.BlockSpec((H, GATES), lambda i: (0, 0)),              # W_hh (compact)
            pl.BlockSpec((H, OUT_PAD), lambda i: (0, 0)),            # W_lin (padded)
            pl.BlockSpec((1, OUT_PAD), lambda i: (0, 0)),            # b_lin (padded)
        ],
        out_specs=pl.BlockSpec((B, OUT_PAD), lambda i: (0, 0)),
        scratch_shapes=[pltpu.VMEM((B, H), jnp.float32),             # h carry
                        pltpu.VMEM((B, H), jnp.float32)],            # c carry
    )

    logits_pad = pl.pallas_call(
        kernel,
        out_shape=jax.ShapeDtypeStruct((B, OUT_PAD), jnp.float32),
        grid_spec=grid_spec,
        compiler_params=pltpu.CompilerParams(
            # Time axis is a serial recurrence.
            # TODO(synk): for B >= ~16 on v7x, add a leading "parallel"
            # batch-tile grid axis so both TensorCores run independent slices.
            dimension_semantics=("arbitrary",),
            vmem_limit_bytes=32 * 1024 * 1024),
    )(xp_rest, h1, c1, w_hh_t, w_lin_p, b_lin_p)

    return logits_pad[:, :C]


def init_params(key, num_words, emb_size, num_class):
    ks = jax.random.split(key, 7)
    scale = 0.1
    return {
        "emb":   scale * jax.random.normal(ks[0], (num_words, emb_size), jnp.float32),
        "w_ih":  scale * jax.random.normal(ks[1], (4 * HIDDEN, emb_size), jnp.float32),
        "w_hh":  scale * jax.random.normal(ks[2], (4 * HIDDEN, HIDDEN), jnp.float32),
        "b_ih":  scale * jax.random.normal(ks[3], (4 * HIDDEN,), jnp.float32),
        "b_hh":  scale * jax.random.normal(ks[4], (4 * HIDDEN,), jnp.float32),
        "w_lin": scale * jax.random.normal(ks[5], (num_class, HIDDEN), jnp.float32),
        "b_lin": scale * jax.random.normal(ks[6], (num_class,), jnp.float32),
    }


def reference_forward(tokens, params):
    """Pure-JAX reference matching torch semantics (gate order i,f,g,o)."""
    hp = jax.lax.Precision.HIGHEST
    emb = params["emb"][tokens]  # (B, T, E)
    B, T, _ = emb.shape
    h = jnp.zeros((B, HIDDEN), jnp.float32)
    c = jnp.zeros((B, HIDDEN), jnp.float32)
    for t in range(T):
        gates = (jnp.dot(emb[:, t, :], params["w_ih"].T, precision=hp)
                 + jnp.dot(h, params["w_hh"].T, precision=hp)
                 + params["b_ih"] + params["b_hh"])
        i_g = jax.nn.sigmoid(gates[:, 0 * HIDDEN:1 * HIDDEN])
        f_g = jax.nn.sigmoid(gates[:, 1 * HIDDEN:2 * HIDDEN])
        g_g = jnp.tanh(gates[:, 2 * HIDDEN:3 * HIDDEN])
        o_g = jax.nn.sigmoid(gates[:, 3 * HIDDEN:4 * HIDDEN])
        c = f_g * c + i_g * g_g
        h = o_g * jnp.tanh(c)
    return jnp.dot(jnp.maximum(h, 0.0), params["w_lin"].T, precision=hp) + params["b_lin"]


if __name__ == "__main__":
    num_words, emb_size, num_class = 100, 16, 2
    B, T = 2, 8

    key = jax.random.PRNGKey(0)
    pkey, tkey = jax.random.split(key)
    params = init_params(pkey, num_words, emb_size, num_class)
    tokens = jax.random.randint(tkey, (B, T), 0, num_words, dtype=jnp.int32)

    logits = text_classifier_forward(tokens, params)
    jax.block_until_ready(logits)

    ref = reference_forward(tokens, params)
    assert logits.shape == (B, num_class)
    # Tolerance relaxed vs. 1e-4: the hoisted input-projection einsum and the
    # in-kernel dots use default MXU precision (the reference uses HIGHEST).
    assert jnp.allclose(logits, ref, atol=1e-3, rtol=1e-2), (logits, ref)

    print("KERNEL_OK")
</pallas_src>

<mosaic_0001>
module attributes {stable_mosaic.version = 11 : i64} {
  func.func @kernel(%arg0: i32, %arg1: memref<7x2x128xf32, #tpu.memory_space<vmem>>, %arg2: memref<2x32xf32, #tpu.memory_space<vmem>>, %arg3: memref<2x32xf32, #tpu.memory_space<vmem>>, %arg4: memref<32x128xf32, #tpu.memory_space<vmem>>, %arg5: memref<32x128xf32, #tpu.memory_space<vmem>>, %arg6: memref<1x128xf32, #tpu.memory_space<vmem>>, %arg7: memref<2x128xf32, #tpu.memory_space<vmem>>, %arg8: memref<2x32xf32, #tpu.memory_space<vmem>>, %arg9: memref<2x32xf32, #tpu.memory_space<vmem>>) attributes {dimension_semantics = [#tpu.dimension_semantics<arbitrary>], iteration_bounds = array<i64: 1>, scalar_prefetch = 0 : i64, scratch_operands = 2 : i64, tpu.core_type = #tpu.core_type<tc>, window_params = [{transform_indices = @transform_0, window_bounds = array<i64: 7, 2, 128>}, {pipeline_mode = #tpu.pipeline_mode<synchronous>, transform_indices = @transform_1, window_bounds = array<i64: 2, 32>}, {pipeline_mode = #tpu.pipeline_mode<synchronous>, transform_indices = @transform_2, window_bounds = array<i64: 2, 32>}, {pipeline_mode = #tpu.pipeline_mode<synchronous>, transform_indices = @transform_3, window_bounds = array<i64: 32, 128>}, {pipeline_mode = #tpu.pipeline_mode<synchronous>, transform_indices = @transform_4, window_bounds = array<i64: 32, 128>}, {pipeline_mode = #tpu.pipeline_mode<synchronous>, transform_indices = @transform_5, window_bounds = array<i64: 1, 128>}, {pipeline_mode = #tpu.pipeline_mode<synchronous>, transform_indices = @transform_6, window_bounds = array<i64: 2, 128>}]} {
    %c0_i32 = arith.constant 0 : i32
    %0 = arith.cmpi eq, %arg0, %c0_i32 : i32
    %1 = arith.extui %0 : i1 to i32
    %c0_i32_0 = arith.constant 0 : i32
    %2 = arith.cmpi ne, %1, %c0_i32_0 : i32
    scf.if %2 {
      %c0_54 = arith.constant 0 : index
      %c0_55 = arith.constant 0 : index
      %221 = vector.load %arg2[%c0_54, %c0_55] : memref<2x32xf32, #tpu.memory_space<vmem>>, vector<2x32xf32>
      %c0_56 = arith.constant 0 : index
      %c0_57 = arith.constant 0 : index
      %222 = vector.load %arg8[%c0_56, %c0_57] : memref<2x32xf32, #tpu.memory_space<vmem>>, vector<2x32xf32>
      tpu.vector_store %arg8[%c0_56, %c0_57], %221 {strides = array<i32>} : memref<2x32xf32, #tpu.memory_space<vmem>>, vector<2x32xf32>,
      %c0_58 = arith.constant 0 : index
      %c0_59 = arith.constant 0 : index
      %223 = vector.load %arg3[%c0_58, %c0_59] : memref<2x32xf32, #tpu.memory_space<vmem>>, vector<2x32xf32>
      %c0_60 = arith.constant 0 : index
      %c0_61 = arith.constant 0 : index
      %224 = vector.load %arg9[%c0_60, %c0_61] : memref<2x32xf32, #tpu.memory_space<vmem>>, vector<2x32xf32>
      tpu.vector_store %arg9[%c0_60, %c0_61], %223 {strides = array<i32>} : memref<2x32xf32, #tpu.memory_space<vmem>>, vector<2x32xf32>,
    } else {
    }
    %c0 = arith.constant 0 : index
    %c0_1 = arith.constant 0 : index
    %3 = vector.load %arg4[%c0, %c0_1] : memref<32x128xf32, #tpu.memory_space<vmem>>, vector<32x128xf32>
    %c0_2 = arith.constant 0 : index
    %c0_3 = arith.constant 0 : index
    %4 = vector.load %arg8[%c0_2, %c0_3] : memref<2x32xf32, #tpu.memory_space<vmem>>, vector<2x32xf32>
    %c0_4 = arith.constant 0 : index
    %c0_5 = arith.constant 0 : index
    %5 = vector.load %arg9[%c0_4, %c0_5] : memref<2x32xf32, #tpu.memory_space<vmem>>, vector<2x32xf32>
    %c0_i32_6 = arith.constant 0 : i32
    %6 = arith.index_cast %c0_i32_6 : i32 to index
    %c0_7 = arith.constant 0 : index
    %c0_8 = arith.constant 0 : index
    %7 = vector.load %arg1[%6, %c0_7, %c0_8] : memref<7x2x128xf32, #tpu.memory_space<vmem>>, vector<1x2x128xf32>
    %8 = vector.shape_cast %7 : vector<1x2x128xf32> to vector<2x128xf32>
    %cst = arith.constant dense<0.000000e+00> : vector<2x128xf32>
    %9 = tpu.matmul %4, %3, %cst {dimension_numbers = #tpu.dot_dimension_numbers<[1], [0], [0], [1], [0, 0, 1, 1], [], []>} : vector<2x32xf32>, vector<32x128xf32>, vector<2x128xf32> -> vector<2x128xf32>
    %10 = arith.addf %8, %9 : vector<2x128xf32>
    %11 = vector.extract_strided_slice %10 {offsets = [0, 0], sizes = [2, 32], strides = [1, 1]} : vector<2x128xf32> to vector<2x32xf32>
    %12 = arith.negf %11 : vector<2x32xf32>
    %13 = math.exp %12 : vector<2x32xf32>
    %cst_9 = arith.constant 1.000000e+00 : f32
    %14 = vector.broadcast %cst_9 : f32 to vector<2x32xf32>
    %15 = arith.addf %14, %13 : vector<2x32xf32>
    %16 = arith.divf %14, %15 : vector<2x32xf32>
    %17 = vector.extract_strided_slice %10 {offsets = [0, 32], sizes = [2, 32], strides = [1, 1]} : vector<2x128xf32> to vector<2x32xf32>
    %18 = arith.negf %17 : vector<2x32xf32>
    %19 = math.exp %18 : vector<2x32xf32>
    %cst_10 = arith.constant 1.000000e+00 : f32
    %20 = vector.broadcast %cst_10 : f32 to vector<2x32xf32>
    %21 = arith.addf %20, %19 : vector<2x32xf32>
    %22 = arith.divf %20, %21 : vector<2x32xf32>
    %23 = vector.extract_strided_slice %10 {offsets = [0, 64], sizes = [2, 32], strides = [1, 1]} : vector<2x128xf32> to vector<2x32xf32>
    %24 = math.tanh %23 : vector<2x32xf32>
    %25 = vector.extract_strided_slice %10 {offsets = [0, 96], sizes = [2, 32], strides = [1, 1]} : vector<2x128xf32> to vector<2x32xf32>
    %26 = arith.negf %25 : vector<2x32xf32>
    %27 = math.exp %26 : vector<2x32xf32>
    %cst_11 = arith.constant 1.000000e+00 : f32
    %28 = vector.broadcast %cst_11 : f32 to vector<2x32xf32>
    %29 = arith.addf %28, %27 : vector<2x32xf32>
    %30 = arith.divf %28, %29 : vector<2x32xf32>
    %31 = arith.mulf %22, %5 : vector<2x32xf32>
    %32 = arith.mulf %16, %24 : vector<2x32xf32>
    %33 = arith.addf %31, %32 : vector<2x32xf32>
    %34 = math.tanh %33 : vector<2x32xf32>
    %35 = arith.mulf %30, %34 : vector<2x32xf32>
    %c1_i32 = arith.constant 1 : i32
    %36 = arith.index_cast %c1_i32 : i32 to index
    %c0_12 = arith.constant 0 : index
    %c0_13 = arith.constant 0 : index
    %37 = vector.load %arg1[%36, %c0_12, %c0_13] : memref<7x2x128xf32, #tpu.memory_space<vmem>>, vector<1x2x128xf32>
    %38 = vector.shape_cast %37 : vector<1x2x128xf32> to vector<2x128xf32>
    %cst_14 = arith.constant dense<0.000000e+00> : vector<2x128xf32>
    %39 = tpu.matmul %35, %3, %cst_14 {dimension_numbers = #tpu.dot_dimension_numbers<[1], [0], [0], [1], [0, 0, 1, 1], [], []>} : vector<2x32xf32>, vector<32x128xf32>, vector<2x128xf32> -> vector<2x128xf32>
    %40 = arith.addf %38, %39 : vector<2x128xf32>
    %41 = vector.extract_strided_slice %40 {offsets = [0, 0], sizes = [2, 32], strides = [1, 1]} : vector<2x128xf32> to vector<2x32xf32>
    %42 = arith.negf %41 : vector<2x32xf32>
    %43 = math.exp %42 : vector<2x32xf32>
    %cst_15 = arith.constant 1.000000e+00 : f32
    %44 = vector.broadcast %cst_15 : f32 to vector<2x32xf32>
    %45 = arith.addf %44, %43 : vector<2x32xf32>
    %46 = arith.divf %44, %45 : vector<2x32xf32>
    %47 = vector.extract_strided_slice %40 {offsets = [0, 32], sizes = [2, 32], strides = [1, 1]} : vector<2x128xf32> to vector<2x32xf32>
    %48 = arith.negf %47 : vector<2x32xf32>
    %49 = math.exp %48 : vector<2x32xf32>
    %cst_16 = arith.constant 1.000000e+00 : f32
    %50 = vector.broadcast %cst_16 : f32 to vector<2x32xf32>
    %51 = arith.addf %50, %49 : vector<2x32xf32>
    %52 = arith.divf %50, %51 : vector<2x32xf32>
    %53 = vector.extract_strided_slice %40 {offsets = [0, 64], sizes = [2, 32], strides = [1, 1]} : vector<2x128xf32> to vector<2x32xf32>
    %54 = math.tanh %53 : vector<2x32xf32>
    %55 = vector.extract_strided_slice %40 {offsets = [0, 96], sizes = [2, 32], strides = [1, 1]} : vector<2x128xf32> to vector<2x32xf32>
    %56 = arith.negf %55 : vector<2x32xf32>
    %57 = math.exp %56 : vector<2x32xf32>
    %cst_17 = arith.constant 1.000000e+00 : f32
    %58 = vector.broadcast %cst_17 : f32 to vector<2x32xf32>
    %59 = arith.addf %58, %57 : vector<2x32xf32>
    %60 = arith.divf %58, %59 : vector<2x32xf32>
    %61 = arith.mulf %52, %33 : vector<2x32xf32>
    %62 = arith.mulf %46, %54 : vector<2x32xf32>
    %63 = arith.addf %61, %62 : vector<2x32xf32>
    %64 = math.tanh %63 : vector<2x32xf32>
    %65 = arith.mulf %60, %64 : vector<2x32xf32>
    %c2_i32 = arith.constant 2 : i32
    %66 = arith.index_cast %c2_i32 : i32 to index
    %c0_18 = arith.constant 0 : index
    %c0_19 = arith.constant 0 : index
    %67 = vector.load %arg1[%66, %c0_18, %c0_19] : memref<7x2x128xf32, #tpu.memory_space<vmem>>, vector<1x2x128xf32>
    %68 = vector.shape_cast %67 : vector<1x2x128xf32> to vector<2x128xf32>
    %cst_20 = arith.constant dense<0.000000e+00> : vector<2x128xf32>
    %69 = tpu.matmul %65, %3, %cst_20 {dimension_numbers = #tpu.dot_dimension_numbers<[1], [0], [0], [1], [0, 0, 1, 1], [], []>} : vector<2x32xf32>, vector<32x128xf32>, vector<2x128xf32> -> vector<2x128xf32>
    %70 = arith.addf %68, %69 : vector<2x128xf32>
    %71 = vector.extract_strided_slice %70 {offsets = [0, 0], sizes = [2, 32], strides = [1, 1]} : vector<2x128xf32> to vector<2x32xf32>
    %72 = arith.negf %71 : vector<2x32xf32>
    %73 = math.exp %72 : vector<2x32xf32>
    %cst_21 = arith.constant 1.000000e+00 : f32
    %74 = vector.broadcast %cst_21 : f32 to vector<2x32xf32>
    %75 = arith.addf %74, %73 : vector<2x32xf32>
    %76 = arith.divf %74, %75 : vector<2x32xf32>
    %77 = vector.extract_strided_slice %70 {offsets = [0, 32], sizes = [2, 32], strides = [1, 1]} : vector<2x128xf32> to vector<2x32xf32>
    %78 = arith.negf %77 : vector<2x32xf32>
    %79 = math.exp %78 : vector<2x32xf32>
    %cst_22 = arith.constant 1.000000e+00 : f32
    %80 = vector.broadcast %cst_22 : f32 to vector<2x32xf32>
    %81 = arith.addf %80, %79 : vector<2x32xf32>
    %82 = arith.divf %80, %81 : vector<2x32xf32>
    %83 = vector.extract_strided_slice %70 {offsets = [0, 64], sizes = [2, 32], strides = [1, 1]} : vector<2x128xf32> to vector<2x32xf32>
    %84 = math.tanh %83 : vector<2x32xf32>
    %85 = vector.extract_strided_slice %70 {offsets = [0, 96], sizes = [2, 32], strides = [1, 1]} : vector<2x128xf32> to vector<2x32xf32>
    %86 = arith.negf %85 : vector<2x32xf32>
    %87 = math.exp %86 : vector<2x32xf32>
    %cst_23 = arith.constant 1.000000e+00 : f32
    %88 = vector.broadcast %cst_23 : f32 to vector<2x32xf32>
    %89 = arith.addf %88, %87 : vector<2x32xf32>
    %90 = arith.divf %88, %89 : vector<2x32xf32>
    %91 = arith.mulf %82, %63 : vector<2x32xf32>
    %92 = arith.mulf %76, %84 : vector<2x32xf32>
    %93 = arith.addf %91, %92 : vector<2x32xf32>
    %94 = math.tanh %93 : vector<2x32xf32>
    %95 = arith.mulf %90, %94 : vector<2x32xf32>
    %c3_i32 = arith.constant 3 : i32
    %96 = arith.index_cast %c3_i32 : i32 to index
    %c0_24 = arith.constant 0 : index
    %c0_25 = arith.constant 0 : index
    %97 = vector.load %arg1[%96, %c0_24, %c0_25] : memref<7x2x128xf32, #tpu.memory_space<vmem>>, vector<1x2x128xf32>
    %98 = vector.shape_cast %97 : vector<1x2x128xf32> to vector<2x128xf32>
    %cst_26 = arith.constant dense<0.000000e+00> : vector<2x128xf32>
    %99 = tpu.matmul %95, %3, %cst_26 {dimension_numbers = #tpu.dot_dimension_numbers<[1], [0], [0], [1], [0, 0, 1, 1], [], []>} : vector<2x32xf32>, vector<32x128xf32>, vector<2x128xf32> -> vector<2x128xf32>
    %100 = arith.addf %98, %99 : vector<2x128xf32>
    %101 = vector.extract_strided_slice %100 {offsets = [0, 0], sizes = [2, 32], strides = [1, 1]} : vector<2x128xf32> to vector<2x32xf32>
    %102 = arith.negf %101 : vector<2x32xf32>
    %103 = math.exp %102 : vector<2x32xf32>
    %cst_27 = arith.constant 1.000000e+00 : f32
    %104 = vector.broadcast %cst_27 : f32 to vector<2x32xf32>
    %105 = arith.addf %104, %103 : vector<2x32xf32>
    %106 = arith.divf %104, %105 : vector<2x32xf32>
    %107 = vector.extract_strided_slice %100 {offsets = [0, 32], sizes = [2, 32], strides = [1, 1]} : vector<2x128xf32> to vector<2x32xf32>
    %108 = arith.negf %107 : vector<2x32xf32>
    %109 = math.exp %108 : vector<2x32xf32>
    %cst_28 = arith.constant 1.000000e+00 : f32
    %110 = vector.broadcast %cst_28 : f32 to vector<2x32xf32>
    %111 = arith.addf %110, %109 : vector<2x32xf32>
    %112 = arith.divf %110, %111 : vector<2x32xf32>
    %113 = vector.extract_strided_slice %100 {offsets = [0, 64], sizes = [2, 32], strides = [1, 1]} : vector<2x128xf32> to vector<2x32xf32>
    %114 = math.tanh %113 : vector<2x32xf32>
    %115 = vector.extract_strided_slice %100 {offsets = [0, 96], sizes = [2, 32], strides = [1, 1]} : vector<2x128xf32> to vector<2x32xf32>
    %116 = arith.negf %115 : vector<2x32xf32>
    %117 = math.exp %116 : vector<2x32xf32>
    %cst_29 = arith.constant 1.000000e+00 : f32
    %118 = vector.broadcast %cst_29 : f32 to vector<2x32xf32>
    %119 = arith.addf %118, %117 : vector<2x32xf32>
    %120 = arith.divf %118, %119 : vector<2x32xf32>
    %121 = arith.mulf %112, %93 : vector<2x32xf32>
    %122 = arith.mulf %106, %114 : vector<2x32xf32>
    %123 = arith.addf %121, %122 : vector<2x32xf32>
    %124 = math.tanh %123 : vector<2x32xf32>
    %125 = arith.mulf %120, %124 : vector<2x32xf32>
    %c4_i32 = arith.constant 4 : i32
    %126 = arith.index_cast %c4_i32 : i32 to index
    %c0_30 = arith.constant 0 : index
    %c0_31 = arith.constant 0 : index
    %127 = vector.load %arg1[%126, %c0_30, %c0_31] : memref<7x2x128xf32, #tpu.memory_space<vmem>>, vector<1x2x128xf32>
    %128 = vector.shape_cast %127 : vector<1x2x128xf32> to vector<2x128xf32>
    %cst_32 = arith.constant dense<0.000000e+00> : vector<2x128xf32>
    %129 = tpu.matmul %125, %3, %cst_32 {dimension_numbers = #tpu.dot_dimension_numbers<[1], [0], [0], [1], [0, 0, 1, 1], [], []>} : vector<2x32xf32>, vector<32x128xf32>, vector<2x128xf32> -> vector<2x128xf32>
    %130 = arith.addf %128, %129 : vector<2x128xf32>
    %131 = vector.extract_strided_slice %130 {offsets = [0, 0], sizes = [2, 32], strides = [1, 1]} : vector<2x128xf32> to vector<2x32xf32>
    %132 = arith.negf %131 : vector<2x32xf32>
    %133 = math.exp %132 : vector<2x32xf32>
    %cst_33 = arith.constant 1.000000e+00 : f32
    %134 = vector.broadcast %cst_33 : f32 to vector<2x32xf32>
    %135 = arith.addf %134, %133 : vector<2x32xf32>
    %136 = arith.divf %134, %135 : vector<2x32xf32>
    %137 = vector.extract_strided_slice %130 {offsets = [0, 32], sizes = [2, 32], strides = [1, 1]} : vector<2x128xf32> to vector<2x32xf32>
    %138 = arith.negf %137 : vector<2x32xf32>
    %139 = math.exp %138 : vector<2x32xf32>
    %cst_34 = arith.constant 1.000000e+00 : f32
    %140 = vector.broadcast %cst_34 : f32 to vector<2x32xf32>
    %141 = arith.addf %140, %139 : vector<2x32xf32>
    %142 = arith.divf %140, %141 : vector<2x32xf32>
    %143 = vector.extract_strided_slice %130 {offsets = [0, 64], sizes = [2, 32], strides = [1, 1]} : vector<2x128xf32> to vector<2x32xf32>
    %144 = math.tanh %143 : vector<2x32xf32>
    %145 = vector.extract_strided_slice %130 {offsets = [0, 96], sizes = [2, 32], strides = [1, 1]} : vector<2x128xf32> to vector<2x32xf32>
    %146 = arith.negf %145 : vector<2x32xf32>
    %147 = math.exp %146 : vector<2x32xf32>
    %cst_35 = arith.constant 1.000000e+00 : f32
    %148 = vector.broadcast %cst_35 : f32 to vector<2x32xf32>
    %149 = arith.addf %148, %147 : vector<2x32xf32>
    %150 = arith.divf %148, %149 : vector<2x32xf32>
    %151 = arith.mulf %142, %123 : vector<2x32xf32>
    %152 = arith.mulf %136, %144 : vector<2x32xf32>
    %153 = arith.addf %151, %152 : vector<2x32xf32>
    %154 = math.tanh %153 : vector<2x32xf32>
    %155 = arith.mulf %150, %154 : vector<2x32xf32>
    %c5_i32 = arith.constant 5 : i32
    %156 = arith.index_cast %c5_i32 : i32 to index
    %c0_36 = arith.constant 0 : index
    %c0_37 = arith.constant 0 : index
    %157 = vector.load %arg1[%156, %c0_36, %c0_37] : memref<7x2x128xf32, #tpu.memory_space<vmem>>, vector<1x2x128xf32>
    %158 = vector.shape_cast %157 : vector<1x2x128xf32> to vector<2x128xf32>
    %cst_38 = arith.constant dense<0.000000e+00> : vector<2x128xf32>
    %159 = tpu.matmul %155, %3, %cst_38 {dimension_numbers = #tpu.dot_dimension_numbers<[1], [0], [0], [1], [0, 0, 1, 1], [], []>} : vector<2x32xf32>, vector<32x128xf32>, vector<2x128xf32> -> vector<2x128xf32>
    %160 = arith.addf %158, %159 : vector<2x128xf32>
    %161 = vector.extract_strided_slice %160 {offsets = [0, 0], sizes = [2, 32], strides = [1, 1]} : vector<2x128xf32> to vector<2x32xf32>
    %162 = arith.negf %161 : vector<2x32xf32>
    %163 = math.exp %162 : vector<2x32xf32>
    %cst_39 = arith.constant 1.000000e+00 : f32
    %164 = vector.broadcast %cst_39 : f32 to vector<2x32xf32>
    %165 = arith.addf %164, %163 : vector<2x32xf32>
    %166 = arith.divf %164, %165 : vector<2x32xf32>
    %167 = vector.extract_strided_slice %160 {offsets = [0, 32], sizes = [2, 32], strides = [1, 1]} : vector<2x128xf32> to vector<2x32xf32>
    %168 = arith.negf %167 : vector<2x32xf32>
    %169 = math.exp %168 : vector<2x32xf32>
    %cst_40 = arith.constant 1.000000e+00 : f32
    %170 = vector.broadcast %cst_40 : f32 to vector<2x32xf32>
    %171 = arith.addf %170, %169 : vector<2x32xf32>
    %172 = arith.divf %170, %171 : vector<2x32xf32>
    %173 = vector.extract_strided_slice %160 {offsets = [0, 64], sizes = [2, 32], strides = [1, 1]} : vector<2x128xf32> to vector<2x32xf32>
    %174 = math.tanh %173 : vector<2x32xf32>
    %175 = vector.extract_strided_slice %160 {offsets = [0, 96], sizes = [2, 32], strides = [1, 1]} : vector<2x128xf32> to vector<2x32xf32>
    %176 = arith.negf %175 : vector<2x32xf32>
    %177 = math.exp %176 : vector<2x32xf32>
    %cst_41 = arith.constant 1.000000e+00 : f32
    %178 = vector.broadcast %cst_41 : f32 to vector<2x32xf32>
    %179 = arith.addf %178, %177 : vector<2x32xf32>
    %180 = arith.divf %178, %179 : vector<2x32xf32>
    %181 = arith.mulf %172, %153 : vector<2x32xf32>
    %182 = arith.mulf %166, %174 : vector<2x32xf32>
    %183 = arith.addf %181, %182 : vector<2x32xf32>
    %184 = math.tanh %183 : vector<2x32xf32>
    %185 = arith.mulf %180, %184 : vector<2x32xf32>
    %c6_i32 = arith.constant 6 : i32
    %186 = arith.index_cast %c6_i32 : i32 to index
    %c0_42 = arith.constant 0 : index
    %c0_43 = arith.constant 0 : index
    %187 = vector.load %arg1[%186, %c0_42, %c0_43] : memref<7x2x128xf32, #tpu.memory_space<vmem>>, vector<1x2x128xf32>
    %188 = vector.shape_cast %187 : vector<1x2x128xf32> to vector<2x128xf32>
    %cst_44 = arith.constant dense<0.000000e+00> : vector<2x128xf32>
    %189 = tpu.matmul %185, %3, %cst_44 {dimension_numbers = #tpu.dot_dimension_numbers<[1], [0], [0], [1], [0, 0, 1, 1], [], []>} : vector<2x32xf32>, vector<32x128xf32>, vector<2x128xf32> -> vector<2x128xf32>
    %190 = arith.addf %188, %189 : vector<2x128xf32>
    %191 = vector.extract_strided_slice %190 {offsets = [0, 0], sizes = [2, 32], strides = [1, 1]} : vector<2x128xf32> to vector<2x32xf32>
    %192 = arith.negf %191 : vector<2x32xf32>
    %193 = math.exp %192 : vector<2x32xf32>
    %cst_45 = arith.constant 1.000000e+00 : f32
    %194 = vector.broadcast %cst_45 : f32 to vector<2x32xf32>
    %195 = arith.addf %194, %193 : vector<2x32xf32>
    %196 = arith.divf %194, %195 : vector<2x32xf32>
    %197 = vector.extract_strided_slice %190 {offsets = [0, 32], sizes = [2, 32], strides = [1, 1]} : vector<2x128xf32> to vector<2x32xf32>
    %198 = arith.negf %197 : vector<2x32xf32>
    %199 = math.exp %198 : vector<2x32xf32>
    %cst_46 = arith.constant 1.000000e+00 : f32
    %200 = vector.broadcast %cst_46 : f32 to vector<2x32xf32>
    %201 = arith.addf %200, %199 : vector<2x32xf32>
    %202 = arith.divf %200, %201 : vector<2x32xf32>
    %203 = vector.extract_strided_slice %190 {offsets = [0, 64], sizes = [2, 32], strides = [1, 1]} : vector<2x128xf32> to vector<2x32xf32>
    %204 = math.tanh %203 : vector<2x32xf32>
    %205 = vector.extract_strided_slice %190 {offsets = [0, 96], sizes = [2, 32], strides = [1, 1]} : vector<2x128xf32> to vector<2x32xf32>
    %206 = arith.negf %205 : vector<2x32xf32>
    %207 = math.exp %206 : vector<2x32xf32>
    %cst_47 = arith.constant 1.000000e+00 : f32
    %208 = vector.broadcast %cst_47 : f32 to vector<2x32xf32>
    %209 = arith.addf %208, %207 : vector<2x32xf32>
    %210 = arith.divf %208, %209 : vector<2x32xf32>
    %211 = arith.mulf %202, %183 : vector<2x32xf32>
    %212 = arith.mulf %196, %204 : vector<2x32xf32>
    %213 = arith.addf %211, %212 : vector<2x32xf32>
    %214 = math.tanh %213 : vector<2x32xf32>
    %215 = arith.mulf %210, %214 : vector<2x32xf32>
    %c7_i32 = arith.constant 7 : i32
    %c0_48 = arith.constant 0 : index
    %c0_49 = arith.constant 0 : index
    %216 = vector.load %arg8[%c0_48, %c0_49] : memref<2x32xf32, #tpu.memory_space<vmem>>, vector<2x32xf32>
    tpu.vector_store %arg8[%c0_48, %c0_49], %215 {strides = array<i32>} : memref<2x32xf32, #tpu.memory_space<vmem>>, vector<2x32xf32>,
    %c0_50 = arith.constant 0 : index
    %c0_51 = arith.constant 0 : index
    %217 = vector.load %arg9[%c0_50, %c0_51] : memref<2x32xf32, #tpu.memory_space<vmem>>, vector<2x32xf32>
    tpu.vector_store %arg9[%c0_50, %c0_51], %213 {strides = array<i32>} : memref<2x32xf32, #tpu.memory_space<vmem>>, vector<2x32xf32>,
    %c0_i32_52 = arith.constant 0 : i32
    %218 = arith.cmpi eq, %arg0, %c0_i32_52 : i32
    %219 = arith.extui %218 : i1 to i32
    %c0_i32_53 = arith.constant 0 : i32
    %220 = arith.cmpi ne, %219, %c0_i32_53 : i32
    scf.if %220 {
      %cst_54 = arith.constant 0.000000e+00 : f32
      %221 = vector.broadcast %cst_54 : f32 to vector<2x32xf32>
      %222 = arith.maximumf %215, %221 : vector<2x32xf32>
      %c0_55 = arith.constant 0 : index
      %c0_56 = arith.constant 0 : index
      %223 = vector.load %arg5[%c0_55, %c0_56] : memref<32x128xf32, #tpu.memory_space<vmem>>, vector<32x128xf32>
      %cst_57 = arith.constant dense<0.000000e+00> : vector<2x128xf32>
      %224 = tpu.matmul %222, %223, %cst_57 {dimension_numbers = #tpu.dot_dimension_numbers<[1], [0], [0], [1], [0, 0, 1, 1], [], []>} : vector<2x32xf32>, vector<32x128xf32>, vector<2x128xf32> -> vector<2x128xf32>
      %c0_58 = arith.constant 0 : index
      %c0_59 = arith.constant 0 : index
      %225 = vector.load %arg6[%c0_58, %c0_59] : memref<1x128xf32, #tpu.memory_space<vmem>>, vector<1x128xf32>
      %226 = vector.broadcast %225 : vector<1x128xf32> to vector<2x128xf32>
      %227 = arith.addf %224, %226 : vector<2x128xf32>
      %c0_60 = arith.constant 0 : index
      %c0_61 = arith.constant 0 : index
      %228 = vector.load %arg7[%c0_60, %c0_61] : memref<2x128xf32, #tpu.memory_space<vmem>>, vector<2x128xf32>
      tpu.vector_store %arg7[%c0_60, %c0_61], %227 {strides = array<i32>} : memref<2x128xf32, #tpu.memory_space<vmem>>, vector<2x128xf32>,
    } else {
    }
    return
  }
  func.func @transform_0(%arg0: i32) -> (i32, i32, i32) {
    %c0_i32 = arith.constant 0 : i32
    %c0_i32_0 = arith.constant 0 : i32
    %c0_i32_1 = arith.constant 0 : i32
    return %arg0, %c0_i32, %c0_i32_0 : i32, i32, i32
  }
  func.func @transform_1(%arg0: i32) -> (i32, i32) {
    %c0_i32 = arith.constant 0 : i32
    %c0_i32_0 = arith.constant 0 : i32
    %c0_i32_1 = arith.constant 0 : i32
    return %c0_i32, %c0_i32_0 : i32, i32
  }
  func.func @transform_2(%arg0: i32) -> (i32, i32) {
    %c0_i32 = arith.constant 0 : i32
    %c0_i32_0 = arith.constant 0 : i32
    %c0_i32_1 = arith.constant 0 : i32
    return %c0_i32, %c0_i32_0 : i32, i32
  }
  func.func @transform_3(%arg0: i32) -> (i32, i32) {
    %c0_i32 = arith.constant 0 : i32
    %c0_i32_0 = arith.constant 0 : i32
    %c0_i32_1 = arith.constant 0 : i32
    return %c0_i32, %c0_i32_0 : i32, i32
  }
  func.func @transform_4(%arg0: i32) -> (i32, i32) {
    %c0_i32 = arith.constant 0 : i32
    %c0_i32_0 = arith.constant 0 : i32
    %c0_i32_1 = arith.constant 0 : i32
    return %c0_i32, %c0_i32_0 : i32, i32
  }
  func.func @transform_5(%arg0: i32) -> (i32, i32) {
    %c0_i32 = arith.constant 0 : i32
    %c0_i32_0 = arith.constant 0 : i32
    %c0_i32_1 = arith.constant 0 : i32
    return %c0_i32, %c0_i32_0 : i32, i32
  }
  func.func @transform_6(%arg0: i32) -> (i32, i32) {
    %c0_i32 = arith.constant 0 : i32
    %c0_i32_0 = arith.constant 0 : i32
    %c0_i32_1 = arith.constant 0 : i32
    return %c0_i32, %c0_i32_0 : i32, i32
  }
}

</mosaic_0001>

<bundles_post_ra>
// kernel: text_classifier_forward.1
= control target key start
LH: loop header
LB: loop body
LE: loop exit
PB: predicated region body
PF: predicated region fallthrough
CT: control target
= control target key end

     0   :  { %vm29_vm0 = vcmask 254976   ;;  %s807_s0 = inlined_call_operand.vmem [shape: f32[7,2,128], index: 0, kind: input, shape index: {}]   ;;  %s808_s1 = inlined_call_operand.vmem [shape: f32[2,32], index: 1, kind: input, shape index: {}]   ;;  %s809_s2 = inlined_call_operand.vmem [shape: f32[2,32], index: 2, kind: input, shape index: {}]   ;;  %s810_s3 = inlined_call_operand.vmem [shape: f32[32,128], index: 3, kind: input, shape index: {}]   ;;  %s811_s4 = inlined_call_operand.vmem [shape: f32[32,128], index: 4, kind: input, shape index: {}]   ;;  %s812_s5 = inlined_call_operand.vmem [shape: f32[1,128], index: 5, kind: input, shape index: {}]   ;;  %s813_s6 = inlined_call_operand.hbm [shape: f32[2,128], index: 6, kind: output, shape index: {}]  }
   0x1   :  { %v36_v0 = vld [vmem:[%s810_s3 + $0x18] sm:$0xff]  ;;  %v35_v1 = vld [vmem:[%s810_s3 + $0x10] sm:$0xff]  ;;  %v34_v2 = vld [vmem:[%s810_s3 + $0x8] sm:$0xff] }
   0x2   :  { %56 = vmatpush.msra.mxu0 %v36_v0  ;;  %v28_v3 = vld [vmem:[%s808_s1] sm:$0x3]  ;;  %125 = vmatpush.msra.mxu1 %v36_v0 }
   0x3   :  { %30 = vst.msk [vmem:[#allocation2] sm:$0x3] %vm29_vm0, %v28_v3  ;;  %190 = vmatpush.msra.mxu2 %v36_v0  ;;  %255 = vmatpush.msra.mxu3 %v36_v0 }
   0x4   :  { %11 = vsyncpa [#allocation5], 0  ;;  %57 = vmatpush.msra.mxu0 %v35_v1  ;;  %126 = vmatpush.msra.mxu1 %v35_v1  ;;  %v33_v4 = vld [vmem:[%s810_s3] sm:$0xff]  ;;  %vm40_vm1 = vcmask 261120   ;;  %s669_s9 = smov 64   ;;  %s670_s10 = smov 32  }
   0x5   :  { %191 = vmatpush.msra.mxu2 %v35_v1  ;;  %256 = vmatpush.msra.mxu3 %v35_v1  ;;  %v31_v6 = vld [vmem:[%s809_s2] sm:$0x3]  ;;  %v563_v35 = vld [vmem:[%s807_s0 + $0x2] sm:$0x3]  ;;  %v566_v61 = vld [vmem:[%s807_s0 + $0x4] sm:$0x3] }
   0x6   :  { %58 = vmatpush.msra.mxu0 %v34_v2  ;;  %127 = vmatpush.msra.mxu1 %v34_v2  ;;  %32 = vst.msk [vmem:[#allocation3] sm:$0x3] %vm29_vm0, %v31_v6  ;;  %v39_v7 = vld [vmem:[%s807_s0] sm:$0x3]  ;;  %s672_s3 = smov [#allocation4]  }
   0x7   :  { %192 = vmatpush.msra.mxu2 %v34_v2  ;;  %257 = vmatpush.msra.mxu3 %v34_v2  ;;  %s550_s7 = sshll.u32 %s672_s3, 4  ;;  %s551_s7 = int_to_ptr.vmem [resolvable:$true] %s550_s7 }
   0x8   :  { %59 = vmatpush.msra.mxu0 %v33_v4  ;;  %128 = vmatpush.msra.mxu1 %v33_v4 }
   0x9   :  { %193 = vmatpush.msra.mxu2 %v33_v4  ;;  %258 = vmatpush.msra.mxu3 %v33_v4 }
   0xa   :  { %v37_v5 = vld [vmem:[#allocation2] sm:$0x3]  ;;  %320 = vmatpush.msrb.mxu0 %v36_v0  ;;  %385 = vmatpush.msrb.mxu1 %v36_v0 }
   0xb   :  { %561 = vmatmul.msk.f32.vlgmr.msra.gmra.mxu0 %vm40_vm1, %v37_v5  ;;  %450 = vmatpush.msrb.mxu2 %v36_v0 }
   0xc   :  { %321 = vmatpush.msrb.mxu0 %v35_v1  ;;  %386 = vmatpush.msrb.mxu1 %v35_v1 }
   0xd   :  { %451 = vmatpush.msrb.mxu2 %v35_v1  ;;  %v38_v11 = vld [vmem:[#allocation3] sm:$0x3] }
   0xe   :  { %322 = vmatpush.msrb.mxu0 %v34_v2  ;;  %387 = vmatpush.msrb.mxu1 %v34_v2 }
   0xf   :  { %452 = vmatpush.msrb.mxu2 %v34_v2 }
  0x10   :  { %323 = vmatpush.msrb.mxu0 %v33_v4  ;;  %388 = vmatpush.msrb.mxu1 %v33_v4 }
  0x11   :  { %453 = vmatpush.msrb.mxu2 %v33_v4 }
  0x88   :  { %v61_v8 = vpop.f32.mrf.mxu0 }
  0x89   :  { %v64_v9 = vadd.f32 %v61_v8, %v39_v7 }
  0x8b   :  { %587 = vtanh.f32 %v64_v9  ;;  %v562_v12 = vmul.f32 -1.442695, %v64_v9 }
  0x8d   :  { %589 = vpow2.f32 %v562_v12 }
  0x91   :  { %v588_v10 = vpop.eup %587 }
  0x92   :  { %91 = vrot.lane.b32.xlu0 %v588_v10, %s669_s9 }
  0x93   :  { %v590_v13 = vpop.eup %589 }
  0x94   :  { %v68_v14 = vadd.f32 1.0, %v590_v13 }
  0x96   :  { %591 = vrcp.f32 %v68_v14  ;;  %v80_v20 = vand.u32 2147483648, %v68_v14  ;;  %vm74_vm3 = vweird.f32 %v68_v14  ;;  %v78_v21 = vand.u32 2147483647, %v68_v14 }
  0x98   :  { %v81_v23 = vor.u32 1.1754944e-38, %v80_v20  ;;  %vm79_vm5 = vcmp.eq.f32.partialorder %v78_v21, 8.507059e+37 }
  0x9a   :  { %86 = vrot.lane.b32.xlu0 %v38_v11, %s670_s10 }
  0x9c   :  { %v592_v15 = vpop.eup %591 }
  0x9d   :  { %v70_v16 = vmul.f32 %v592_v15, %v68_v14  ;;  %vm75_vm2 = vweird.f32 %v592_v15 }
  0x9e   :  { %vm76_vm4 = vmor %vm74_vm3, %vm75_vm2 }
  0x9f   :  { %v71_v17 = vsub.f32 1.0, %v70_v16 }
  0xa1   :  { %v72_v18 = vmul.f32 %v592_v15, %v71_v17 }
  0xa3   :  { %v73_v19 = vadd.f32 %v592_v15, %v72_v18 }
  0xa5   :  { %v77_v22 = vsel %vm76_vm4, %v592_v15, %v73_v19 }
  0xa6   :  { %v82_v25 = vsel %vm79_vm5, %v81_v23, %v77_v22  ;;  %v569_v23 = vld [vmem:[%s807_s0 + $0x6] sm:$0x3] }
 0x104   :  { %v92_v24 = vpop.permute.xlu0 %91 }
 0x105   :  { %v94_v26 = vmul.f32 %v92_v24, %v82_v25 }
 0x107   :  { %96 = vrot.lane.b32.xlu1 %v94_v26, %s670_s10 }
 0x10c   :  { %v87_v27 = vpop.permute.xlu0 %86 }
 0x10d   :  { %v89_v28 = vmul.f32 %v87_v27, %v82_v25 }
 0x179   :  { %v97_v29 = vpop.permute.xlu1 %96 }
 0x17a   :  { %v99_v30 = vadd.f32 %v97_v29, %v89_v28 }
 0x17c   :  { %593 = vtanh.f32 %v99_v30 }
 0x182   :  { %v594_v31 = vpop.eup %593 }
 0x183   :  { %102 = vrot.lane.b32.xlu1 %v594_v31, %s669_s9 }
 0x1f5   :  { %v103_v32 = vpop.permute.xlu1 %102 }
 0x1f6   :  { %v105_v33 = vmul.f32 %v103_v32, %v82_v25 }
 0x1f8   :  { %109 = vrot.lane.b32.xlu2 %v105_v33, %s670_s10 }
 0x252   :  { %v110_v34 = vpop.permute.xlu2 %109 }
 0x253   :  { %564 = vmatmul.msk.f32.vlgmr.msra.gmra.mxu1 %vm40_vm1, %v110_v34 }
 0x2d0   :  { %v130_v36 = vpop.f32.mrf.mxu1 }
 0x2d1   :  { %v133_v37 = vadd.f32 %v563_v35, %v130_v36 }
 0x2d3   :  { %595 = vtanh.f32 %v133_v37  ;;  %v565_v39 = vmul.f32 -1.442695, %v133_v37 }
 0x2d5   :  { %597 = vpow2.f32 %v565_v39 }
 0x2d9   :  { %v596_v38 = vpop.eup %595 }
 0x2da   :  { %156 = vrot.lane.b32.xlu2 %v596_v38, %s669_s9 }
 0x2db   :  { %v598_v40 = vpop.eup %597 }
 0x2dc   :  { %v137_v41 = vadd.f32 1.0, %v598_v40 }
 0x2de   :  { %599 = vrcp.f32 %v137_v41  ;;  %v149_v47 = vand.u32 2147483648, %v137_v41  ;;  %vm143_vm7 = vweird.f32 %v137_v41  ;;  %v147_v48 = vand.u32 2147483647, %v137_v41 }
 0x2e0   :  { %v150_v50 = vor.u32 1.1754944e-38, %v149_v47  ;;  %vm148_vm9 = vcmp.eq.f32.partialorder %v147_v48, 8.507059e+37 }
 0x2e4   :  { %v600_v42 = vpop.eup %599 }
 0x2e5   :  { %v139_v43 = vmul.f32 %v600_v42, %v137_v41  ;;  %vm144_vm6 = vweird.f32 %v600_v42 }
 0x2e6   :  { %vm145_vm8 = vmor %vm143_vm7, %vm144_vm6 }
 0x2e7   :  { %v140_v44 = vsub.f32 1.0, %v139_v43 }
 0x2e9   :  { %v141_v45 = vmul.f32 %v600_v42, %v140_v44 }
 0x2eb   :  { %v142_v46 = vadd.f32 %v600_v42, %v141_v45 }
 0x2ed   :  { %v146_v49 = vsel %vm145_vm8, %v600_v42, %v142_v46 }
 0x2ee   :  { %v151_v52 = vsel %vm148_vm9, %v150_v50, %v146_v49  ;;  %v572_v49 = vld [vmem:[%s807_s0 + $0x8] sm:$0x3] }
 0x2ef   :  { %v154_v54 = vmul.f32 %v151_v52, %v99_v30 }
 0x334   :  { %v157_v51 = vpop.permute.xlu2 %156 }
 0x335   :  { %v159_v53 = vmul.f32 %v157_v51, %v151_v52 }
 0x337   :  { %161 = vrot.lane.b32.xlu0 %v159_v53, %s670_s10 }
 0x3a9   :  { %v162_v55 = vpop.permute.xlu0 %161 }
 0x3aa   :  { %v164_v56 = vadd.f32 %v162_v55, %v154_v54 }
 0x3ac   :  { %601 = vtanh.f32 %v164_v56 }
 0x3b2   :  { %v602_v57 = vpop.eup %601 }
 0x3b3   :  { %167 = vrot.lane.b32.xlu1 %v602_v57, %s669_s9 }
 0x425   :  { %v168_v58 = vpop.permute.xlu1 %167 }
 0x426   :  { %v170_v59 = vmul.f32 %v168_v58, %v151_v52 }
 0x428   :  { %174 = vrot.lane.b32.xlu2 %v170_v59, %s670_s10 }
 0x482   :  { %v175_v60 = vpop.permute.xlu2 %174 }
 0x483   :  { %567 = vmatmul.msk.f32.vlgmr.msra.gmra.mxu2 %vm40_vm1, %v175_v60 }
 0x506   :  { %v195_v62 = vpop.f32.mrf.mxu2 }
 0x507   :  { %v198_v63 = vadd.f32 %v566_v61, %v195_v62 }
 0x509   :  { %603 = vtanh.f32 %v198_v63  ;;  %v568_v1 = vmul.f32 -1.442695, %v198_v63 }
 0x50b   :  { %605 = vpow2.f32 %v568_v1 }
 0x50f   :  { %v604_v0 = vpop.eup %603 }
 0x510   :  { %221 = vrot.lane.b32.xlu0 %v604_v0, %s669_s9 }
 0x511   :  { %v606_v2 = vpop.eup %605 }
 0x512   :  { %v202_v3 = vadd.f32 1.0, %v606_v2 }
 0x514   :  { %607 = vrcp.f32 %v202_v3  ;;  %v214_v9 = vand.u32 2147483648, %v202_v3  ;;  %vm208_vm11 = vweird.f32 %v202_v3  ;;  %v212_v10 = vand.u32 2147483647, %v202_v3 }
 0x516   :  { %v215_v12 = vor.u32 1.1754944e-38, %v214_v9  ;;  %vm213_vm13 = vcmp.eq.f32.partialorder %v212_v10, 8.507059e+37 }
 0x51a   :  { %v608_v4 = vpop.eup %607 }
 0x51b   :  { %v204_v5 = vmul.f32 %v608_v4, %v202_v3  ;;  %vm209_vm10 = vweird.f32 %v608_v4 }
 0x51c   :  { %vm210_vm12 = vmor %vm208_vm11, %vm209_vm10 }
 0x51d   :  { %v205_v6 = vsub.f32 1.0, %v204_v5 }
 0x51f   :  { %v206_v7 = vmul.f32 %v608_v4, %v205_v6 }
 0x521   :  { %v207_v8 = vadd.f32 %v608_v4, %v206_v7 }
 0x523   :  { %v211_v11 = vsel %vm210_vm12, %v608_v4, %v207_v8 }
 0x524   :  { %v216_v14 = vsel %vm213_vm13, %v215_v12, %v211_v11  ;;  %v575_v11 = vld [vmem:[%s807_s0 + $0xa] sm:$0x3] }
 0x525   :  { %v219_v16 = vmul.f32 %v216_v14, %v164_v56 }
 0x582   :  { %v222_v13 = vpop.permute.xlu0 %221 }
 0x583   :  { %v224_v15 = vmul.f32 %v222_v13, %v216_v14 }
 0x585   :  { %226 = vrot.lane.b32.xlu1 %v224_v15, %s670_s10 }
 0x5f7   :  { %v227_v17 = vpop.permute.xlu1 %226 }
 0x5f8   :  { %v229_v18 = vadd.f32 %v227_v17, %v219_v16 }
 0x5fa   :  { %609 = vtanh.f32 %v229_v18 }
 0x600   :  { %v610_v19 = vpop.eup %609 }
 0x601   :  { %232 = vrot.lane.b32.xlu2 %v610_v19, %s669_s9 }
 0x65b   :  { %v233_v20 = vpop.permute.xlu2 %232 }
 0x65c   :  { %v235_v21 = vmul.f32 %v233_v20, %v216_v14 }
 0x65e   :  { %239 = vrot.lane.b32.xlu0 %v235_v21, %s670_s10 }
 0x6d0   :  { %v240_v22 = vpop.permute.xlu0 %239 }
 0x6d1   :  { %570 = vmatmul.msk.f32.vlgmr.msra.gmra.mxu3 %vm40_vm1, %v240_v22 }
 0x754   :  { %v260_v24 = vpop.f32.mrf.mxu3 }
 0x755   :  { %v263_v25 = vadd.f32 %v569_v23, %v260_v24 }
 0x757   :  { %611 = vtanh.f32 %v263_v25  ;;  %v571_v27 = vmul.f32 -1.442695, %v263_v25 }
 0x759   :  { %613 = vpow2.f32 %v571_v27 }
 0x75d   :  { %v612_v26 = vpop.eup %611 }
 0x75e   :  { %286 = vrot.lane.b32.xlu1 %v612_v26, %s669_s9 }
 0x75f   :  { %v614_v28 = vpop.eup %613 }
 0x760   :  { %v267_v29 = vadd.f32 1.0, %v614_v28 }
 0x762   :  { %615 = vrcp.f32 %v267_v29  ;;  %v279_v35 = vand.u32 2147483648, %v267_v29  ;;  %vm273_vm15 = vweird.f32 %v267_v29  ;;  %v277_v36 = vand.u32 2147483647, %v267_v29 }
 0x764   :  { %v280_v38 = vor.u32 1.1754944e-38, %v279_v35  ;;  %vm278_vm3 = vcmp.eq.f32.partialorder %v277_v36, 8.507059e+37 }
 0x768   :  { %v616_v30 = vpop.eup %615 }
 0x769   :  { %v269_v31 = vmul.f32 %v616_v30, %v267_v29  ;;  %vm274_vm14 = vweird.f32 %v616_v30 }
 0x76a   :  { %vm275_vm2 = vmor %vm273_vm15, %vm274_vm14 }
 0x76b   :  { %v270_v32 = vsub.f32 1.0, %v269_v31 }
 0x76d   :  { %v271_v33 = vmul.f32 %v616_v30, %v270_v32 }
 0x76f   :  { %v272_v34 = vadd.f32 %v616_v30, %v271_v33 }
 0x771   :  { %v276_v37 = vsel %vm275_vm2, %v616_v30, %v272_v34 }
 0x772   :  { %v281_v40 = vsel %vm278_vm3, %v280_v38, %v276_v37  ;;  %v578_v37 = vld [vmem:[%s807_s0 + $0xc] sm:$0x3]  ;;  %s671_s0 = smov 96  }
 0x773   :  { %v284_v42 = vmul.f32 %v281_v40, %v229_v18 }
 0x7d0   :  { %v287_v39 = vpop.permute.xlu1 %286 }
 0x7d1   :  { %v289_v41 = vmul.f32 %v287_v39, %v281_v40 }
 0x7d3   :  { %291 = vrot.lane.b32.xlu2 %v289_v41, %s670_s10 }
 0x82d   :  { %v292_v43 = vpop.permute.xlu2 %291 }
 0x82e   :  { %v294_v44 = vadd.f32 %v292_v43, %v284_v42 }
 0x830   :  { %617 = vtanh.f32 %v294_v44 }
 0x836   :  { %v618_v45 = vpop.eup %617 }
 0x837   :  { %297 = vrot.lane.b32.xlu0 %v618_v45, %s669_s9 }
 0x8a9   :  { %v298_v46 = vpop.permute.xlu0 %297 }
 0x8aa   :  { %v300_v47 = vmul.f32 %v298_v46, %v281_v40 }
 0x8ac   :  { %304 = vrot.lane.b32.xlu1 %v300_v47, %s670_s10 }
 0x91e   :  { %v305_v48 = vpop.permute.xlu1 %304 }
 0x91f   :  { %573 = vmatmul.msk.f32.vlgmr.msrb.gmra.mxu0 %vm40_vm1, %v305_v48 }
 0x99c   :  { %v325_v50 = vpop.f32.mrf.mxu0 }
 0x99d   :  { %v328_v51 = vadd.f32 %v572_v49, %v325_v50 }
 0x99f   :  { %619 = vtanh.f32 %v328_v51  ;;  %v574_v53 = vmul.f32 -1.442695, %v328_v51 }
 0x9a1   :  { %621 = vpow2.f32 %v574_v53 }
 0x9a5   :  { %v620_v52 = vpop.eup %619 }
 0x9a6   :  { %351 = vrot.lane.b32.xlu2 %v620_v52, %s669_s9 }
 0x9a7   :  { %v622_v54 = vpop.eup %621 }
 0x9a8   :  { %v332_v55 = vadd.f32 1.0, %v622_v54 }
 0x9aa   :  { %623 = vrcp.f32 %v332_v55  ;;  %v344_v61 = vand.u32 2147483648, %v332_v55  ;;  %vm338_vm5 = vweird.f32 %v332_v55  ;;  %v342_v62 = vand.u32 2147483647, %v332_v55 }
 0x9ac   :  { %v345_v0 = vor.u32 1.1754944e-38, %v344_v61  ;;  %vm343_vm7 = vcmp.eq.f32.partialorder %v342_v62, 8.507059e+37 }
 0x9b0   :  { %v624_v56 = vpop.eup %623 }
 0x9b1   :  { %v334_v57 = vmul.f32 %v624_v56, %v332_v55  ;;  %vm339_vm4 = vweird.f32 %v624_v56 }
 0x9b2   :  { %vm340_vm6 = vmor %vm338_vm5, %vm339_vm4 }
 0x9b3   :  { %v335_v58 = vsub.f32 1.0, %v334_v57 }
 0x9b5   :  { %v336_v59 = vmul.f32 %v624_v56, %v335_v58 }
 0x9b7   :  { %v337_v60 = vadd.f32 %v624_v56, %v336_v59 }
 0x9b9   :  { %v341_v63 = vsel %vm340_vm6, %v624_v56, %v337_v60 }
 0x9ba   :  { %v346_v2 = vsel %vm343_vm7, %v345_v0, %v341_v63  ;;  %v514_v0 = vld [vmem:[%s811_s4 + $0x18] sm:$0xff] }
 0x9bb   :  { %v349_v4 = vmul.f32 %v346_v2, %v294_v44  ;;  %536 = vmatpush.msrb.mxu3 %v514_v0 }
 0xa00   :  { %v352_v1 = vpop.permute.xlu2 %351 }
 0xa01   :  { %v354_v3 = vmul.f32 %v352_v1, %v346_v2  ;;  %v513_v1 = vld [vmem:[%s811_s4 + $0x10] sm:$0xff] }
 0xa02   :  { %537 = vmatpush.msrb.mxu3 %v513_v1 }
 0xa03   :  { %356 = vrot.lane.b32.xlu0 %v354_v3, %s670_s10  ;;  %v511_v3 = vld [vmem:[%s811_s4] sm:$0xff] }
 0xa75   :  { %v357_v5 = vpop.permute.xlu0 %356 }
 0xa76   :  { %v359_v6 = vadd.f32 %v357_v5, %v349_v4 }
 0xa78   :  { %625 = vtanh.f32 %v359_v6 }
 0xa7e   :  { %v626_v7 = vpop.eup %625 }
 0xa7f   :  { %362 = vrot.lane.b32.xlu1 %v626_v7, %s669_s9 }
 0xaf1   :  { %v363_v8 = vpop.permute.xlu1 %362 }
 0xaf2   :  { %v365_v9 = vmul.f32 %v363_v8, %v346_v2  ;;  %v512_v2 = vld [vmem:[%s811_s4 + $0x8] sm:$0xff] }
 0xaf3   :  { %538 = vmatpush.msrb.mxu3 %v512_v2 }
 0xaf4   :  { %369 = vrot.lane.b32.xlu2 %v365_v9, %s670_s10 }
 0xaf5   :  { %539 = vmatpush.msrb.mxu3 %v511_v3 }
 0xb4e   :  { %v370_v10 = vpop.permute.xlu2 %369 }
 0xb4f   :  { %576 = vmatmul.msk.f32.vlgmr.msrb.gmra.mxu1 %vm40_vm1, %v370_v10 }
 0xbcc   :  { %v390_v12 = vpop.f32.mrf.mxu1 }
 0xbcd   :  { %v393_v13 = vadd.f32 %v575_v11, %v390_v12 }
 0xbcf   :  { %627 = vtanh.f32 %v393_v13  ;;  %v577_v15 = vmul.f32 -1.442695, %v393_v13 }
 0xbd1   :  { %629 = vpow2.f32 %v577_v15 }
 0xbd5   :  { %v628_v14 = vpop.eup %627 }
 0xbd6   :  { %416 = vrot.lane.b32.xlu0 %v628_v14, %s669_s9 }
 0xbd7   :  { %v630_v16 = vpop.eup %629 }
 0xbd8   :  { %v397_v17 = vadd.f32 1.0, %v630_v16 }
 0xbda   :  { %631 = vrcp.f32 %v397_v17  ;;  %v409_v23 = vand.u32 2147483648, %v397_v17  ;;  %vm403_vm9 = vweird.f32 %v397_v17  ;;  %v407_v24 = vand.u32 2147483647, %v397_v17 }
 0xbdc   :  { %v410_v26 = vor.u32 1.1754944e-38, %v409_v23  ;;  %vm408_vm11 = vcmp.eq.f32.partialorder %v407_v24, 8.507059e+37 }
 0xbe0   :  { %v632_v18 = vpop.eup %631 }
 0xbe1   :  { %v399_v19 = vmul.f32 %v632_v18, %v397_v17  ;;  %vm404_vm8 = vweird.f32 %v632_v18 }
 0xbe2   :  { %vm405_vm10 = vmor %vm403_vm9, %vm404_vm8 }
 0xbe3   :  { %v400_v20 = vsub.f32 1.0, %v399_v19 }
 0xbe5   :  { %v401_v21 = vmul.f32 %v632_v18, %v400_v20 }
 0xbe7   :  { %v402_v22 = vadd.f32 %v632_v18, %v401_v21 }
 0xbe9   :  { %v406_v25 = vsel %vm405_vm10, %v632_v18, %v402_v22 }
 0xbea   :  { %v411_v28 = vsel %vm408_vm11, %v410_v26, %v406_v25 }
 0xbeb   :  { %v414_v30 = vmul.f32 %v411_v28, %v359_v6  ;;  %v586_v6 = vld [vmem:[%s812_s5] ss:$0 sm:$0xff] }
 0xc48   :  { %v417_v27 = vpop.permute.xlu0 %416 }
 0xc49   :  { %v419_v29 = vmul.f32 %v417_v27, %v411_v28 }
 0xc4b   :  { %421 = vrot.lane.b32.xlu1 %v419_v29, %s670_s10 }
 0xcbd   :  { %v422_v31 = vpop.permute.xlu1 %421 }
 0xcbe   :  { %v424_v32 = vadd.f32 %v422_v31, %v414_v30 }
 0xcc0   :  { %633 = vtanh.f32 %v424_v32 }
 0xcc6   :  { %v634_v33 = vpop.eup %633 }
 0xcc7   :  { %427 = vrot.lane.b32.xlu2 %v634_v33, %s669_s9 }
 0xd21   :  { %v428_v34 = vpop.permute.xlu2 %427 }
 0xd22   :  { %v430_v35 = vmul.f32 %v428_v34, %v411_v28 }
 0xd24   :  { %434 = vrot.lane.b32.xlu0 %v430_v35, %s670_s10 }
 0xd96   :  { %v435_v36 = vpop.permute.xlu0 %434 }
 0xd97   :  { %579 = vmatmul.msk.f32.vlgmr.msrb.gmra.mxu2 %vm40_vm1, %v435_v36 }
 0xe1a   :  { %v455_v38 = vpop.f32.mrf.mxu2 }
 0xe1b   :  { %v458_v39 = vadd.f32 %v578_v37, %v455_v38 }
 0xe1d   :  { %635 = vtanh.f32 %v458_v39  ;;  %v580_v41 = vmul.f32 -1.442695, %v458_v39 }
 0xe1f   :  { %637 = vpow2.f32 %v580_v41 }
 0xe23   :  { %v636_v40 = vpop.eup %635 }
 0xe24   :  { %481 = vrot.lane.b32.xlu1 %v636_v40, %s669_s9 }
 0xe25   :  { %v638_v42 = vpop.eup %637 }
 0xe26   :  { %v462_v43 = vadd.f32 1.0, %v638_v42 }
 0xe28   :  { %639 = vrcp.f32 %v462_v43  ;;  %v474_v49 = vand.u32 2147483648, %v462_v43  ;;  %vm468_vm13 = vweird.f32 %v462_v43  ;;  %v472_v50 = vand.u32 2147483647, %v462_v43 }
 0xe2a   :  { %v475_v52 = vor.u32 1.1754944e-38, %v474_v49  ;;  %vm473_vm15 = vcmp.eq.f32.partialorder %v472_v50, 8.507059e+37 }
 0xe2e   :  { %v640_v44 = vpop.eup %639 }
 0xe2f   :  { %v464_v45 = vmul.f32 %v640_v44, %v462_v43  ;;  %vm469_vm12 = vweird.f32 %v640_v44 }
 0xe30   :  { %vm470_vm14 = vmor %vm468_vm13, %vm469_vm12 }
 0xe31   :  { %v465_v46 = vsub.f32 1.0, %v464_v45 }
 0xe33   :  { %v466_v47 = vmul.f32 %v640_v44, %v465_v46 }
 0xe35   :  { %v467_v48 = vadd.f32 %v640_v44, %v466_v47 }
 0xe37   :  { %v471_v51 = vsel %vm470_vm14, %v640_v44, %v467_v48 }
 0xe38   :  { %v476_v54 = vsel %vm473_vm15, %v475_v52, %v471_v51 }
 0xe39   :  { %v479_v56 = vmul.f32 %v476_v54, %v424_v32 }
 0xe96   :  { %v482_v53 = vpop.permute.xlu1 %481 }
 0xe97   :  { %v484_v55 = vmul.f32 %v482_v53, %v476_v54 }
 0xe99   :  { %486 = vrot.lane.b32.xlu2 %v484_v55, %s670_s10 }
 0xef3   :  { %v487_v57 = vpop.permute.xlu2 %486 }
 0xef4   :  { %v489_v58 = vadd.f32 %v487_v57, %v479_v56 }
 0xef6   :  { %641 = vtanh.f32 %v489_v58 }
 0xefc   :  { %v642_v59 = vpop.eup %641 }
 0xefd   :  { %492 = vrot.lane.b32.xlu0 %v642_v59, %s669_s9 }
 0xf05   :  { %503 = vrot.lane.b32.xlu0 %v489_v58, %s671_s0 }
 0xf6f   :  { %v493_v60 = vpop.permute.xlu0 %492 }
 0xf70   :  { %v495_v61 = vmul.f32 %v493_v60, %v476_v54 }
 0xf72   :  { %v510_v62 = vmax.f32 %v495_v61, 0.0  ;;  %497 = vrot.lane.b32.xlu2 %v495_v61, %s670_s10 }
 0xf74   :  { %520 = vrot.lane.b32.xlu1 %v510_v62, %s670_s10  ;;  %s552_s10 = sshll.u32 %s813_s6, 4  ;;  %s553_s10 = int_to_ptr.hbm [resolvable:$true] %s552_s10 }
 0xf77   :  { %v504_v63 = vpop.permute.xlu0 %503 }
 0xf78   :  { %506 = vst.msk [vmem:[#allocation3] sm:$0x3] %vm29_vm0, %v504_v63 }
 0xfcc   :  { %v498_v4 = vpop.permute.xlu2 %497 }
 0xfcd   :  { %501 = vst.msk [vmem:[#allocation2] sm:$0x3] %vm29_vm0, %v498_v4 }
 0xfe6   :  { %v521_v5 = vpop.permute.xlu1 %520 }
 0xfe7   :  { %581 = vmatmul.msk.f32.vlgmr.msrb.gmra.mxu3 %vm40_vm1, %v521_v5 }
0x106a   :  { %v541_v7 = vpop.f32.mrf.mxu3 }
0x106b   :  { %v542_v8 = vadd.f32 %v586_v6, %v541_v7 }
0x106d   :  { %544 = vst [vmem:[#allocation4] sm:$0x3] %v542_v8 }
0x106e   :  { %555 = dma.vmem_to_hbm [thread:$0]  %s551_s7, 32, %s553_s10, [#allocation5]  }
0x106f   :  { %667 = dma.done.wait [#allocation5], 32  }
0x1070   :  { %668 = vsyncadd [#allocation5], 4294967264 }
0x1071   :  { %560 = vsyncpa [#allocation5], 1 }

</bundles_post_ra>
